<compile_context>
chip_gen: v7x
topology: tpu7x:2x2x1
jax: 0.10.0
libtpu: 0.0.40
codegen_flags: <defaults>
</compile_context>

<pallas_src>
import functools

import jax
import jax.numpy as jnp
from jax import lax
from jax.experimental import pallas as pl
from jax.experimental.pallas import tpu as pltpu

_LANES = 128
_SUBLANES = 8


def _round_up(x, m):
    return ((x + m - 1) // m) * m


def _fold_tile(x1_ref, x2_ref, *, tr, ch, unroll, masked, block_start, rows_total):
    """Sum((x1-x2)^2) over this (tr, 128) tile, folded into an (8, 128) f32 partial.

    Works ch rows at a time so intermediates stay in vregs instead of materializing
    full-tile VMEM temporaries at large tile sizes.
    """
    nchunks = tr // ch

    def chunk(j, acc):
        r0 = j * ch if isinstance(j, int) else pl.multiple_of(j * ch, ch)
        a = x1_ref[pl.ds(r0, ch), :].astype(jnp.float32)
        b = x2_ref[pl.ds(r0, ch), :].astype(jnp.float32)
        d = a - b
        sq = d * d
        if masked:
            # Rows at/after rows_total hold undefined VMEM contents -> zero them out.
            valid = rows_total - (block_start + j * ch)
            row_ids = lax.broadcasted_iota(jnp.int32, (ch, _LANES), 0)
            sq = jnp.where(row_ids < valid, sq, jnp.float32(0.0))
        # Layout-trivial fold: (ch,128) -> (ch//8, 8, 128) and add the vreg-sized slices.
        return acc + jnp.sum(sq.reshape(ch // _SUBLANES, _SUBLANES, _LANES), axis=0)

    def outer(t, acc):
        base = t * unroll
        for u in range(unroll):          # static partial unroll inside the fori body
            acc = chunk(base + u, acc)
        return acc

    acc0 = jnp.zeros((_SUBLANES, _LANES), jnp.float32)
    return lax.fori_loop(0, nchunks // unroll, outer, acc0)


def _fro_norm_kernel(x1_ref, x2_ref, o_ref, acc_ref, *,
                     rows_total, tr, ch, unroll, tiles_per_core, needs_mask):
    c = pl.program_id(0)       # TensorCore split ("parallel")
    i = pl.program_id(1)       # reduction over this core's tiles ("arbitrary")

    @pl.when(i == 0)
    def _():
        acc_ref[...] = jnp.zeros_like(acc_ref)

    fold = functools.partial(_fold_tile, x1_ref, x2_ref, tr=tr, ch=ch,
                             unroll=unroll, rows_total=rows_total)

    if needs_mask:
        # Unclamped global start row of this block (the index_map clamps the DMA; we mask here
        # so ragged / duplicated overshoot blocks contribute exactly 0).
        block_start = (c * tiles_per_core + i) * tr
        is_ragged = block_start + tr > rows_total

        @pl.when(is_ragged)
        def _():
            acc_ref[...] += fold(masked=True, block_start=block_start)

        @pl.when(jnp.logical_not(is_ragged))
        def _():
            acc_ref[...] += fold(masked=False, block_start=block_start)
    else:
        acc_ref[...] += fold(masked=False, block_start=0)

    @pl.when(i == pl.num_programs(1) - 1)
    def _():
        o_ref[...] = jnp.sum(acc_ref[...], axis=(0, 1), keepdims=True)


def fro_norm(x1, x2, *, target_block_bytes=2 * 1024 * 1024):
    """mean((x1 - x2)**2) over all elements (f32 accumulation). Returns a () float32."""
    n = x1.size
    assert x2.size == n, "inputs must have the same number of elements"
    assert n > 0

    x1f = x1.reshape(-1)
    x2f = x2.reshape(-1)

    rem = n % _LANES
    n_main = n - rem
    rows = n_main // _LANES

    total = jnp.float32(0.0)

    if rows > 0:
        a = (x1f if rem == 0 else x1f[:n_main]).reshape(rows, _LANES)
        b = (x2f if rem == 0 else x2f[:n_main]).reshape(rows, _LANES)

        itemsize = jnp.dtype(a.dtype).itemsize
        sub = max(_SUBLANES, 32 // itemsize)             # 8 (f32) / 16 (bf16) / 32 (int8)

        # ~target_block_bytes per input block, rounded to the dtype's sublane packing.
        target_tr = _round_up(max(sub, target_block_bytes // (_LANES * itemsize)), sub)
        tr = min(target_tr, _round_up(rows, sub))
        if tr > 64:
            tr = _round_up(tr, 64)                       # keep the 64-row chunking exact
            ch = 64
        else:
            ch = tr

        nchunks = tr // ch
        unroll = 1
        for cand in (8, 4, 2):
            if nchunks % cand == 0:
                unroll = cand
                break

        num_tiles = pl.cdiv(rows, tr)
        ncores = 2 if num_tiles >= 2 else 1              # v7x: 2 TCs; serialized elsewhere
        tiles_per_core = pl.cdiv(num_tiles, ncores)
        needs_mask = (rows % tr != 0) or (ncores * tiles_per_core != num_tiles)

        def in_map(c, i):
            # Clamp so the DMA never targets a fully out-of-range block; the kernel masks
            # duplicated / ragged rows using the unclamped start row.
            return (jnp.minimum(c * tiles_per_core + i, num_tiles - 1), 0)

        kernel = functools.partial(
            _fro_norm_kernel, rows_total=rows, tr=tr, ch=ch, unroll=unroll,
            tiles_per_core=tiles_per_core, needs_mask=needs_mask)

        partials = pl.pallas_call(
            kernel,
            out_shape=jax.ShapeDtypeStruct((ncores, 1), jnp.float32),
            grid_spec=pltpu.PrefetchScalarGridSpec(
                num_scalar_prefetch=0,
                grid=(ncores, tiles_per_core),
                in_specs=[
                    pl.BlockSpec((tr, _LANES), in_map),
                    pl.BlockSpec((tr, _LANES), in_map),
                ],
                out_specs=pl.BlockSpec((1, 1), lambda c, i: (c, 0)),
                scratch_shapes=[pltpu.VMEM((_SUBLANES, _LANES), jnp.float32)],
            ),
            compiler_params=pltpu.CompilerParams(
                dimension_semantics=("parallel", "arbitrary"),
            ),
        )(a, b)

        total = total + jnp.sum(partials)

    if rem:
        # <128-element lane tail: reduce with plain jnp instead of padding / copying the
        # whole flattened array through HBM.
        t1 = x1f[n_main:].astype(jnp.float32)
        t2 = x2f[n_main:].astype(jnp.float32)
        dt = t1 - t2
        total = total + jnp.sum(dt * dt)

    return total / jnp.float32(n)


def fro_norm_ref(x1, x2):
    d = x1.astype(jnp.float32) - x2.astype(jnp.float32)
    return jnp.mean(d * d)


if __name__ == "__main__":
    key = jax.random.PRNGKey(0)

    # Primary check: small NCHW-like inputs (2048 elements = 16 x 128 lanes, fully aligned).
    k1, k2 = jax.random.split(key)
    x1 = jax.random.normal(k1, (2, 4, 16, 16), dtype=jnp.float32)
    x2 = jax.random.normal(k2, (2, 4, 16, 16), dtype=jnp.float32)
    loss = jax.block_until_ready(fro_norm(x1, x2))
    ref = fro_norm_ref(x1, x2)
    assert jnp.allclose(loss, ref, rtol=1e-5, atol=1e-6), (loss, ref)

    # Secondary check: small block size forces >=2 tiles, the 2-core split and a ragged last tile.
    k3, k4 = jax.random.split(k2)
    y1 = jax.random.normal(k3, (3, 1024), dtype=jnp.float32)
    y2 = jax.random.normal(k4, (3, 1024), dtype=jnp.float32)
    loss2 = jax.block_until_ready(fro_norm(y1, y2, target_block_bytes=16 * _LANES * 4))
    ref2 = fro_norm_ref(y1, y2)
    assert jnp.allclose(loss2, ref2, rtol=1e-5, atol=1e-6), (loss2, ref2)

    # Tertiary check: element count not a multiple of 128 (kernel prefix + jnp lane tail).
    k5, k6 = jax.random.split(k4)
    z1 = jax.random.normal(k5, (10, 130), dtype=jnp.float32)
    z2 = jax.random.normal(k6, (10, 130), dtype=jnp.float32)
    loss3 = jax.block_until_ready(fro_norm(z1, z2))
    ref3 = fro_norm_ref(z1, z2)
    assert jnp.allclose(loss3, ref3, rtol=1e-5, atol=1e-6), (loss3, ref3)

    print("KERNEL_OK")
</pallas_src>

<mosaic_0001>
module attributes {stable_mosaic.version = 11 : i64} {
  func.func @_fro_norm_kernel(%arg0: i32, %arg1: i32, %arg2: memref<16x128xf32, #tpu.memory_space<vmem>>, %arg3: memref<16x128xf32, #tpu.memory_space<vmem>>, %arg4: memref<1x1xf32, #tpu.memory_space<vmem>>, %arg5: memref<8x128xf32, #tpu.memory_space<vmem>>) attributes {dimension_semantics = [#tpu.dimension_semantics<parallel>, #tpu.dimension_semantics<arbitrary>], iteration_bounds = array<i64: 1, 1>, scalar_prefetch = 0 : i64, scratch_operands = 1 : i64, tpu.core_type = #tpu.core_type<tc>, window_params = [{transform_indices = @transform_0, window_bounds = array<i64: 16, 128>}, {transform_indices = @transform_1, window_bounds = array<i64: 16, 128>}, {transform_indices = @transform_2, window_bounds = array<i64: 1, 1>}]} {
    %c0_i32 = arith.constant 0 : i32
    %0 = arith.cmpi eq, %arg1, %c0_i32 : i32
    %1 = arith.extui %0 : i1 to i32
    %c0_i32_0 = arith.constant 0 : i32
    %2 = arith.cmpi ne, %1, %c0_i32_0 : i32
    scf.if %2 {
      %cst_12 = arith.constant 0.000000e+00 : f32
      %23 = vector.broadcast %cst_12 : f32 to vector<8x128xf32>
      %c0_13 = arith.constant 0 : index
      %c0_14 = arith.constant 0 : index
      %24 = vector.load %arg5[%c0_13, %c0_14] : memref<8x128xf32, #tpu.memory_space<vmem>>, vector<8x128xf32>
      tpu.vector_store %arg5[%c0_13, %c0_14], %23 {strides = array<i32>} : memref<8x128xf32, #tpu.memory_space<vmem>>, vector<8x128xf32>,
    } else {
    }
    %c0 = arith.constant 0 : index
    %c0_1 = arith.constant 0 : index
    %3 = vector.load %arg5[%c0, %c0_1] : memref<8x128xf32, #tpu.memory_space<vmem>>, vector<8x128xf32>
    %cst = arith.constant 0.000000e+00 : f32
    %4 = vector.broadcast %cst : f32 to vector<8x128xf32>
    %c0_i32_2 = arith.constant 0 : i32
    %c1_i32 = arith.constant 1 : i32
    %5 = arith.muli %c0_i32_2, %c1_i32 : i32
    %c0_i32_3 = arith.constant 0 : i32
    %6 = arith.addi %5, %c0_i32_3 : i32
    %c16_i32 = arith.constant 16 : i32
    %7 = arith.muli %6, %c16_i32 : i32
    %8 = tpu.assume_multiple %7, 16 : i32
    %9 = arith.index_cast %8 : i32 to index
    %c0_4 = arith.constant 0 : index
    %10 = vector.load %arg2[%9, %c0_4] : memref<16x128xf32, #tpu.memory_space<vmem>>, vector<16x128xf32>
    %11 = arith.index_cast %8 : i32 to index
    %c0_5 = arith.constant 0 : index
    %12 = vector.load %arg3[%11, %c0_5] : memref<16x128xf32, #tpu.memory_space<vmem>>, vector<16x128xf32>
    %13 = arith.subf %10, %12 : vector<16x128xf32>
    %14 = arith.mulf %13, %13 : vector<16x128xf32>
    %15 = vector.shape_cast %14 : vector<16x128xf32> to vector<2x8x128xf32>
    %cst_6 = arith.constant dense<0.000000e+00> : vector<8x128xf32>
    %16 = vector.multi_reduction <add>, %15, %cst_6 [0] : vector<2x8x128xf32> to vector<8x128xf32>
    %17 = arith.addf %4, %16 : vector<8x128xf32>
    %c1_i32_7 = arith.constant 1 : i32
    %18 = arith.addf %3, %17 : vector<8x128xf32>
    %c0_8 = arith.constant 0 : index
    %c0_9 = arith.constant 0 : index
    %19 = vector.load %arg5[%c0_8, %c0_9] : memref<8x128xf32, #tpu.memory_space<vmem>>, vector<8x128xf32>
    tpu.vector_store %arg5[%c0_8, %c0_9], %18 {strides = array<i32>} : memref<8x128xf32, #tpu.memory_space<vmem>>, vector<8x128xf32>,
    %c0_i32_10 = arith.constant 0 : i32
    %20 = arith.cmpi eq, %arg1, %c0_i32_10 : i32
    %21 = arith.extui %20 : i1 to i32
    %c0_i32_11 = arith.constant 0 : i32
    %22 = arith.cmpi ne, %21, %c0_i32_11 : i32
    scf.if %22 {
      %c0_12 = arith.constant 0 : index
      %c0_13 = arith.constant 0 : index
      %23 = vector.load %arg5[%c0_12, %c0_13] : memref<8x128xf32, #tpu.memory_space<vmem>>, vector<8x128xf32>
      %24 = vector.shape_cast %23 : vector<8x128xf32> to vector<1x8x128xf32>
      %cst_14 = arith.constant dense<0.000000e+00> : vector<1xf32>
      %25 = vector.multi_reduction <add>, %24, %cst_14 [1, 2] : vector<1x8x128xf32> to vector<1xf32>
      %26 = vector.shape_cast %25 : vector<1xf32> to vector<1x1x1xf32>
      %27 = vector.extract %26[0, 0, 0] : f32 from vector<1x1x1xf32>
      %28 = vector.broadcast %27 : f32 to vector<1x1xf32>
      %c0_15 = arith.constant 0 : index
      %c0_16 = arith.constant 0 : index
      %29 = vector.load %arg4[%c0_15, %c0_16] : memref<1x1xf32, #tpu.memory_space<vmem>>, vector<1x1xf32>
      tpu.vector_store %arg4[%c0_15, %c0_16], %28 {strides = array<i32>} : memref<1x1xf32, #tpu.memory_space<vmem>>, vector<1x1xf32>,
    } else {
    }
    return
  }
  func.func @transform_0(%arg0: i32, %arg1: i32) -> (i32, i32) {
    %c1_i32 = arith.constant 1 : i32
    %0 = arith.muli %arg0, %c1_i32 : i32
    %1 = arith.addi %0, %arg1 : i32
    %c0_i32 = arith.constant 0 : i32
    %2 = arith.minsi %1, %c0_i32 : i32
    %c0_i32_0 = arith.constant 0 : i32
    %c0_i32_1 = arith.constant 0 : i32
    return %2, %c0_i32_0 : i32, i32
  }
  func.func @transform_1(%arg0: i32, %arg1: i32) -> (i32, i32) {
    %c1_i32 = arith.constant 1 : i32
    %0 = arith.muli %arg0, %c1_i32 : i32
    %1 = arith.addi %0, %arg1 : i32
    %c0_i32 = arith.constant 0 : i32
    %2 = arith.minsi %1, %c0_i32 : i32
    %c0_i32_0 = arith.constant 0 : i32
    %c0_i32_1 = arith.constant 0 : i32
    return %2, %c0_i32_0 : i32, i32
  }
  func.func @transform_2(%arg0: i32, %arg1: i32) -> (i32, i32) {
    %c0_i32 = arith.constant 0 : i32
    %c0_i32_0 = arith.constant 0 : i32
    return %arg0, %c0_i32 : i32, i32
  }
}

</mosaic_0001>

<bundles_post_ra>
// kernel: tpu_custom_call.1
= control target key start
LH: loop header
LB: loop body
LE: loop exit
PB: predicated region body
PF: predicated region fallthrough
CT: control target
= control target key end

     0   :  { %7 = vsyncpa [#allocation4], 0  ;;  %s249_s0 = inlined_call_operand.hbm [shape: f32[16,128], index: 0, kind: input, shape index: {}]   ;;  %s250_s1 = inlined_call_operand.hbm [shape: f32[16,128], index: 1, kind: input, shape index: {}]   ;;  %s251_s2 = inlined_call_operand.hbm [shape: f32[1,1], index: 2, kind: output, shape index: {}]  }
   0x1   :  { %8 = vsyncpa [#allocation7], 0 }
   0x2   :  { %9 = vsyncpa [#allocation5], 0  ;;  %s193_s9 = smov [#allocation3]   ;;  %s121_s13 = scalar_lea.hbm %s249_s0, 256 }
   0x3   :  { %s21_s10 = sshll.u32 %s193_s9, 4  ;;  %p122_p0 = scmp.ne.s32.totalorder %s249_s0, %s121_s13  ;;  %s22_s10 = int_to_ptr.vmem [resolvable:$true] %s21_s10 }
   0x4   :  { %p125_p1 = scmp.lt.u32.totalorder %s121_s13, %s249_s0 }
   0x6   :  { %p127_p2 = pnand %p125_p1, %p122_p0 }
   0x8   :  { %130 = shalt.err (!%p127_p2)
}
   0x9   :  { %s131_s18 = scalar_lea.vmem %s22_s10, 256  ;;  %p136_p4 = scmp.lt.s32.totalorder %s22_s10, %s22_s10 }
   0xa   :  { %p132_p3 = scmp.ne.s32.totalorder %s22_s10, %s131_s18  ;;  %p137_p5 = scmp.lt.s32.totalorder %s131_s18, %s131_s18 }
   0xc   :  { %p138_p6 = por %p137_p5, %p136_p4 }
   0xe   :  { %p139_p7 = pnand %p138_p6, %p132_p3 }
  0x10   :  { %142 = shalt.err (!%p139_p7)
}
  0x11   :  { %s194_s19 = smov 128   ;;  %s195_s20 = smov 8  }
  0x12   :  { %27 = dma.hbm_to_vmem [thread:$0]  %s249_s0, 256, %s22_s10, [#allocation4], %s194_s19, %s194_s19, %s195_s20  }
  0x13   :  { %s196_s23 = smov [#allocation6]   ;;  %s143_s27 = scalar_lea.hbm %s250_s1, 256 }
  0x14   :  { %s39_s24 = sshll.u32 %s196_s23, 4  ;;  %p144_p8 = scmp.ne.s32.totalorder %s250_s1, %s143_s27  ;;  %s40_s24 = int_to_ptr.vmem [resolvable:$true] %s39_s24 }
  0x15   :  { %p147_p9 = scmp.lt.u32.totalorder %s143_s27, %s250_s1 }
  0x17   :  { %p149_p10 = pnand %p147_p9, %p144_p8 }
  0x19   :  { %152 = shalt.err (!%p149_p10)
}
  0x1a   :  { %s153_s4 = scalar_lea.vmem %s40_s24, 256  ;;  %p158_p12 = scmp.lt.s32.totalorder %s40_s24, %s40_s24 }
  0x1b   :  { %p154_p11 = scmp.ne.s32.totalorder %s40_s24, %s153_s4  ;;  %p159_p13 = scmp.lt.s32.totalorder %s153_s4, %s153_s4 }
  0x1d   :  { %p160_p0 = por %p159_p13, %p158_p12 }
  0x1f   :  { %p161_p1 = pnand %p160_p0, %p154_p11 }
  0x21   :  { %164 = shalt.err (!%p161_p1)
}
  0x22   :  { %45 = dma.hbm_to_vmem [thread:$0]  %s250_s1, 256, %s40_s24, [#allocation7], %s194_s19, %s194_s19, %s195_s20  }
  0x23   :  { %187 = dma.done.wait [#allocation4], 256  }
  0x24   :  { %188 = vsyncadd [#allocation4], 4294967040 }
  0x25   :  { %189 = dma.done.wait [#allocation7], 256  }
  0x26   :  { %190 = vsyncadd [#allocation7], 4294967040  ;;  %v66_v0 = vld [vmem:[#allocation3] sm:$0xff]  ;;  %v67_v1 = vld [vmem:[#allocation3 + $0x8] sm:$0xff]  ;;  %s197_s1 = smov [#allocation8]   ;;  %vm92_vm0 = vcmask 0  }
  0x27   :  { %v68_v2 = vld [vmem:[#allocation6] sm:$0xff]  ;;  %v69_v3 = vld [vmem:[#allocation6 + $0x8] sm:$0xff]  ;;  %s100_s6 = sshll.u32 %s197_s1, 4  ;;  %s101_s6 = int_to_ptr.vmem [resolvable:$true] %s100_s6 }
  0x28   :  { %v70_v4 = vsub.f32 %v66_v0, %v68_v2  ;;  %v71_v5 = vsub.f32 %v67_v1, %v69_v3  ;;  %s165_s8 = scalar_lea.vmem %s101_s6, 16  ;;  %s169_s9 = scalar_lea.vmem %s101_s6, 32 }
  0x29   :  { %p166_p2 = scmp.ne.s32.totalorder %s101_s6, %s165_s8  ;;  %p170_p3 = scmp.lt.s32.totalorder %s101_s6, %s101_s6 }
  0x2a   :  { %v72_v6 = vmul.f32 %v70_v4, %v70_v4  ;;  %v73_v7 = vmul.f32 %v71_v5, %v71_v5  ;;  %p171_p4 = scmp.lt.s32.totalorder %s169_s9, %s165_s8 }
  0x2c   :  { %v74_v8 = vadd.f32 %v73_v7, %v72_v6  ;;  %p172_p5 = por %p171_p4, %p170_p3 }
  0x2e   :  { %82 = vadd.xlane.f32.xlu0 %v74_v8  ;;  %p173_p6 = pnand %p172_p5, %p166_p2 }
  0xbb   :  { %v83_v9 = vpop.xlane.xlu0 %82 }
  0xbc   :  { %v84_v10 = vrot.slane %v83_v9, 4 }
  0xbe   :  { %v85_v11 = vadd.f32 %v84_v10, %v83_v9 }
  0xc0   :  { %v86_v12 = vrot.slane %v85_v11, 2 }
  0xc2   :  { %v87_v13 = vadd.f32 %v86_v12, %v85_v11 }
  0xc4   :  { %v88_v14 = vrot.slane %v87_v13, 1 }
  0xc6   :  { %v89_v15 = vadd.f32 %v88_v14, %v87_v13 }
  0xc8   :  { %114 = vpush %v89_v15 }
  0xf9   :  { %s115_s7 = spop %114 }
  0xfa   :  { %v91_v16 = vstv %s115_s7 }
  0xfb   :  { %93 = vst.msk [vmem:[#allocation8] sm:$0x1] %vm92_vm0, %v91_v16 }
  0xfc   :  { %176 = shalt.err (!%p173_p6)
}
  0xfd   :  { %s177_s12 = scalar_lea.hbm %s251_s2, 16 }
  0xfe   :  { %p178_p7 = scmp.ne.s32.totalorder %s251_s2, %s177_s12  ;;  %p181_p8 = scmp.lt.u32.totalorder %s177_s12, %s251_s2 }
 0x100   :  { %p183_p9 = pnand %p181_p8, %p178_p7 }
 0x102   :  { %186 = shalt.err (!%p183_p9)
}
 0x103   :  { %103 = dma.vmem_to_hbm [thread:$0]  %s101_s6, 16, %s251_s2, [#allocation5]  }
 0x104   :  { %191 = dma.done.wait [#allocation5], 16  }
 0x105   :  { %192 = vsyncadd [#allocation5], 4294967280 }
 0x106   :  { %107 = vsyncpa [#allocation4], 1 }
 0x107   :  { %108 = vsyncpa [#allocation7], 1 }
 0x108   :  { %109 = vsyncpa [#allocation5], 1 }

</bundles_post_ra>
